<compile_context>
chip_gen: v6e
topology: v6e:2x2x1
jax: 0.10.0
libtpu: 0.0.40
codegen_flags: <defaults>
</compile_context>

<pallas_src>
import jax
import jax.numpy as jnp
from jax.experimental import pallas as pl
from jax.experimental.pallas import tpu as pltpu

_LANES = 128
_SUBLANES = 8


def _round_up(n, m):
    return ((n + m - 1) // m) * m


def _decoder_kernel(x_ref, w1_ref, b1_ref, w2_ref, b2_ref, o_ref):
    # fc1 on the MXU: (TB, Hp) @ (Hp, Hp) with f32 accumulation.
    h = jnp.dot(x_ref[...], w1_ref[...], preferred_element_type=jnp.float32)
    # Bias + ReLU in f32 on the VPU (single sweep over the activation tile).
    h = jnp.maximum(h + b1_ref[...], 0.0)
    # fc2 on the MXU: (TB, Hp) @ (Hp, Op) with f32 accumulation.
    out = jnp.dot(h.astype(w2_ref.dtype), w2_ref[...],
                  preferred_element_type=jnp.float32)
    o_ref[...] = (out + b2_ref[...]).astype(o_ref.dtype)


def tabular_decoder(x, w1, b1, w2, b2, *, block_b=512,
                    matmul_dtype=jnp.bfloat16):
    """x: (B, H); w1: (H, H); b1: (H,); w2: (H, O); b2: (O,) -> (B, O)."""
    B, H = x.shape
    O = w2.shape[1]
    out_dtype = x.dtype

    # Lane-pad feature dims to 128, sublane/tile-pad the batch.
    Hp = _round_up(H, _LANES)
    Op = _round_up(O, _LANES)
    TB = min(_round_up(B, _SUBLANES), _round_up(block_b, _SUBLANES))
    Bp = _round_up(B, TB)
    num_tiles = Bp // TB

    # Zero-pad inputs in the wrapper; padded rows/cols contribute zeros to the
    # contractions, so the sliced result is exact.
    xp = jnp.pad(x.astype(matmul_dtype), ((0, Bp - B), (0, Hp - H)))
    w1p = jnp.pad(w1.astype(matmul_dtype), ((0, Hp - H), (0, Hp - H)))
    w2p = jnp.pad(w2.astype(matmul_dtype), ((0, Hp - H), (0, Op - O)))
    b1p = jnp.pad(b1.astype(jnp.float32), (0, Hp - H)).reshape(1, Hp)
    b2p = jnp.pad(b2.astype(jnp.float32), (0, Op - O)).reshape(1, Op)

    itm = jnp.dtype(matmul_dtype).itemsize
    cost = pl.CostEstimate(
        flops=2 * Bp * Hp * (Hp + Op),
        transcendentals=0,
        bytes_accessed=(Bp * Hp * itm + Hp * Hp * itm + Hp * Op * itm
                        + Hp * 4 + Op * 4
                        + Bp * Op * jnp.dtype(out_dtype).itemsize),
    )

    out_p = pl.pallas_call(
        _decoder_kernel,
        out_shape=jax.ShapeDtypeStruct((Bp, Op), out_dtype),
        grid_spec=pltpu.PrefetchScalarGridSpec(
            num_scalar_prefetch=0,
            grid=(num_tiles,),
            in_specs=[
                pl.BlockSpec((TB, Hp), lambda i: (i, 0)),   # x: batch-tiled
                pl.BlockSpec((Hp, Hp), lambda i: (0, 0)),   # W1: VMEM-resident
                pl.BlockSpec((1, Hp), lambda i: (0, 0)),    # b1: VMEM-resident
                pl.BlockSpec((Hp, Op), lambda i: (0, 0)),   # W2: VMEM-resident
                pl.BlockSpec((1, Op), lambda i: (0, 0)),    # b2: VMEM-resident
            ],
            out_specs=pl.BlockSpec((TB, Op), lambda i: (i, 0)),
        ),
        compiler_params=pltpu.CompilerParams(
            dimension_semantics=("parallel",)),
        cost_estimate=cost,
    )(xp, w1p, b1p, w2p, b2p)

    return out_p[:B, :O]


def _init_params(key, hidden_dim, output_dim, dtype=jnp.float32):
    # Deterministic init mimicking nn.Linear's U(-1/sqrt(fan_in), 1/sqrt(fan_in)).
    k1, k2, k3, k4 = jax.random.split(key, 4)
    bound = 1.0 / jnp.sqrt(hidden_dim)
    w1 = jax.random.uniform(k1, (hidden_dim, hidden_dim), dtype,
                            minval=-bound, maxval=bound)
    b1 = jax.random.uniform(k2, (hidden_dim,), dtype,
                            minval=-bound, maxval=bound)
    w2 = jax.random.uniform(k3, (hidden_dim, output_dim), dtype,
                            minval=-bound, maxval=bound)
    b2 = jax.random.uniform(k4, (output_dim,), dtype,
                            minval=-bound, maxval=bound)
    return w1, b1, w2, b2


if __name__ == "__main__":
    batch = 64          # > one tile so the batch grid is exercised
    hidden_dim = 32
    output_dim = 16

    key = jax.random.PRNGKey(0)
    kx, kp = jax.random.split(key)
    x = jax.random.normal(kx, (batch, hidden_dim), jnp.float32)
    w1, b1, w2, b2 = _init_params(kp, hidden_dim, output_dim)

    # Small block_b so grid=(4,) and the pipelined / parallel path is exercised.
    out = tabular_decoder(x, w1, b1, w2, b2, block_b=16)
    out = jax.block_until_ready(out)

    # Pure-JAX reference with matching numerics (bf16 MXU operands, f32 accum).
    bf = jnp.bfloat16
    h_ref = jnp.maximum(
        jnp.dot(x.astype(bf), w1.astype(bf),
                preferred_element_type=jnp.float32) + b1, 0.0)
    ref = jnp.dot(h_ref.astype(bf), w2.astype(bf),
                  preferred_element_type=jnp.float32) + b2

    assert out.shape == (batch, output_dim)
    assert jnp.allclose(out, ref, atol=1e-3, rtol=1e-3), \
        float(jnp.max(jnp.abs(out - ref)))

    print("KERNEL_OK")
</pallas_src>

<mosaic_0001>
module attributes {stable_mosaic.version = 11 : i64} {
  func.func @_decoder_kernel(%arg0: i32, %arg1: memref<16x128xbf16, #tpu.memory_space<vmem>>, %arg2: memref<128x128xbf16, #tpu.memory_space<vmem>>, %arg3: memref<1x128xf32, #tpu.memory_space<vmem>>, %arg4: memref<128x128xbf16, #tpu.memory_space<vmem>>, %arg5: memref<1x128xf32, #tpu.memory_space<vmem>>, %arg6: memref<16x128xf32, #tpu.memory_space<vmem>>) attributes {dimension_semantics = [#tpu.dimension_semantics<parallel>], iteration_bounds = array<i64: 4>, scalar_prefetch = 0 : i64, scratch_operands = 0 : i64, tpu.core_type = #tpu.core_type<tc>, window_params = [{transform_indices = @transform_0, window_bounds = array<i64: 16, 128>}, {pipeline_mode = #tpu.pipeline_mode<synchronous>, transform_indices = @transform_1, window_bounds = array<i64: 128, 128>}, {pipeline_mode = #tpu.pipeline_mode<synchronous>, transform_indices = @transform_2, window_bounds = array<i64: 1, 128>}, {pipeline_mode = #tpu.pipeline_mode<synchronous>, transform_indices = @transform_3, window_bounds = array<i64: 128, 128>}, {pipeline_mode = #tpu.pipeline_mode<synchronous>, transform_indices = @transform_4, window_bounds = array<i64: 1, 128>}, {transform_indices = @transform_5, window_bounds = array<i64: 16, 128>}]} {
    %c0 = arith.constant 0 : index
    %c0_0 = arith.constant 0 : index
    %0 = vector.load %arg1[%c0, %c0_0] : memref<16x128xbf16, #tpu.memory_space<vmem>>, vector<16x128xbf16>
    %c0_1 = arith.constant 0 : index
    %c0_2 = arith.constant 0 : index
    %1 = vector.load %arg2[%c0_1, %c0_2] : memref<128x128xbf16, #tpu.memory_space<vmem>>, vector<128x128xbf16>
    %cst = arith.constant dense<0.000000e+00> : vector<16x128xf32>
    %2 = tpu.matmul %0, %1, %cst {dimension_numbers = #tpu.dot_dimension_numbers<[1], [0], [0], [1], [0, 0, 1, 1], [], []>} : vector<16x128xbf16>, vector<128x128xbf16>, vector<16x128xf32> -> vector<16x128xf32>
    %c0_3 = arith.constant 0 : index
    %c0_4 = arith.constant 0 : index
    %3 = vector.load %arg3[%c0_3, %c0_4] : memref<1x128xf32, #tpu.memory_space<vmem>>, vector<1x128xf32>
    %4 = vector.broadcast %3 : vector<1x128xf32> to vector<16x128xf32>
    %5 = arith.addf %2, %4 : vector<16x128xf32>
    %cst_5 = arith.constant 0.000000e+00 : f32
    %6 = vector.broadcast %cst_5 : f32 to vector<16x128xf32>
    %7 = arith.maximumf %5, %6 : vector<16x128xf32>
    %8 = arith.truncf %7 : vector<16x128xf32> to vector<16x128xbf16>
    %c0_6 = arith.constant 0 : index
    %c0_7 = arith.constant 0 : index
    %9 = vector.load %arg4[%c0_6, %c0_7] : memref<128x128xbf16, #tpu.memory_space<vmem>>, vector<128x128xbf16>
    %cst_8 = arith.constant dense<0.000000e+00> : vector<16x128xf32>
    %10 = tpu.matmul %8, %9, %cst_8 {dimension_numbers = #tpu.dot_dimension_numbers<[1], [0], [0], [1], [0, 0, 1, 1], [], []>} : vector<16x128xbf16>, vector<128x128xbf16>, vector<16x128xf32> -> vector<16x128xf32>
    %c0_9 = arith.constant 0 : index
    %c0_10 = arith.constant 0 : index
    %11 = vector.load %arg5[%c0_9, %c0_10] : memref<1x128xf32, #tpu.memory_space<vmem>>, vector<1x128xf32>
    %12 = vector.broadcast %11 : vector<1x128xf32> to vector<16x128xf32>
    %13 = arith.addf %10, %12 : vector<16x128xf32>
    %c0_11 = arith.constant 0 : index
    %c0_12 = arith.constant 0 : index
    %14 = vector.load %arg6[%c0_11, %c0_12] : memref<16x128xf32, #tpu.memory_space<vmem>>, vector<16x128xf32>
    tpu.vector_store %arg6[%c0_11, %c0_12], %13 {strides = array<i32>} : memref<16x128xf32, #tpu.memory_space<vmem>>, vector<16x128xf32>,
    return
  }
  func.func @transform_0(%arg0: i32) -> (i32, i32) {
    %c0_i32 = arith.constant 0 : i32
    %c0_i32_0 = arith.constant 0 : i32
    return %arg0, %c0_i32 : i32, i32
  }
  func.func @transform_1(%arg0: i32) -> (i32, i32) {
    %c0_i32 = arith.constant 0 : i32
    %c0_i32_0 = arith.constant 0 : i32
    %c0_i32_1 = arith.constant 0 : i32
    return %c0_i32, %c0_i32_0 : i32, i32
  }
  func.func @transform_2(%arg0: i32) -> (i32, i32) {
    %c0_i32 = arith.constant 0 : i32
    %c0_i32_0 = arith.constant 0 : i32
    %c0_i32_1 = arith.constant 0 : i32
    return %c0_i32, %c0_i32_0 : i32, i32
  }
  func.func @transform_3(%arg0: i32) -> (i32, i32) {
    %c0_i32 = arith.constant 0 : i32
    %c0_i32_0 = arith.constant 0 : i32
    %c0_i32_1 = arith.constant 0 : i32
    return %c0_i32, %c0_i32_0 : i32, i32
  }
  func.func @transform_4(%arg0: i32) -> (i32, i32) {
    %c0_i32 = arith.constant 0 : i32
    %c0_i32_0 = arith.constant 0 : i32
    %c0_i32_1 = arith.constant 0 : i32
    return %c0_i32, %c0_i32_0 : i32, i32
  }
  func.func @transform_5(%arg0: i32) -> (i32, i32) {
    %c0_i32 = arith.constant 0 : i32
    %c0_i32_0 = arith.constant 0 : i32
    return %arg0, %c0_i32 : i32, i32
  }
}

</mosaic_0001>

<bundles_post_ra>
// kernel: tpu_custom_call.1
= control target key start
LH: loop header
LB: loop body
LE: loop exit
PB: predicated region body
PF: predicated region fallthrough
CT: control target
= control target key end

     0   :  { %10 = vsyncpa [#allocation3], 0  ;;  %s1200_s0 = inlined_call_operand.hbm [shape: bf16[64,128], index: 0, kind: input, shape index: {}]   ;;  %s1201_s1 = inlined_call_operand.hbm [shape: bf16[128,128], index: 1, kind: input, shape index: {}]   ;;  %s1202_s2 = inlined_call_operand.vmem [shape: f32[1,128], index: 2, kind: input, shape index: {}]   ;;  %s1203_s3 = inlined_call_operand.hbm [shape: bf16[128,128], index: 3, kind: input, shape index: {}]   ;;  %s1204_s4 = inlined_call_operand.vmem [shape: f32[1,128], index: 4, kind: input, shape index: {}]   ;;  %s1205_s5 = inlined_call_operand.hbm [shape: f32[64,128], index: 5, kind: output, shape index: {}]  }
   0x1   :  { %12 = vsyncpa [#allocation3 + $0x1], 0 }
   0x2   :  { %13 = vsyncpa [#allocation6], 0 }
   0x3   :  { %14 = vsyncpa [#allocation4], 0 }
   0x4   :  { %16 = vsyncpa [#allocation4 + $0x1], 0  ;;  %s995_s18 = smov 0   ;;  %s997_s19 = smov 0  }
   0x5   :  { %s999_s20 = smov 0   ;;  %s1001_s21 = smov 0  }
   0x6 LB: > { %s1016_s22 = sadd.s32 4294967295, %s953_s21   ;;  %s618_s23 = sadd.s32 4294967294, %s953_s21   ;;  %s953_s21 = sphi %s1001_s21, %s1227_s21   ;;  %s949_s20 = sphi %s999_s20, %s1226_s20   ;;  %s945_s19 = sphi %s997_s19, %s1225_s19   ;;  %s941_s18 = sphi %s995_s18, %s1224_s18  }
   0x7   : > { %p42_p0 = scmp.ne.s32.totalorder %s945_s19, %s941_s18  ;;  %p1206_p1 = scmp.eq.s32.totalorder %s1016_s22, 0 }
   0x8   : > { %p150_p2 = scmp.eq.s32.totalorder %s1016_s22, 3  ;;  %p156_p3 = scmp.eq.s32.totalorder %s618_s23, 3 }
   0x9   : > { %p1025_p4 = por %p1206_p1, %p42_p0  ;;  %p619_p5 = scmp.ge.s32.totalorder %s953_s21, 1 }
   0xa   : > { %p1030_p6 = por %p156_p3, %p42_p0  ;;  %p163_p7 = scmp.lt.s32.totalorder %s953_s21, 5 }
   0xb   : > { %s1211_s24 = scalar_select %p1025_p4, 1, 0 }
   0xc   : > { %s1212_s25 = scalar_select %p1030_p6, 1, 0 }
   0xd   : > { %p1035_p8 = pnand %p619_p5, %p163_p7  ;;  %s955_s27 = smov [#allocation5]  }
   0xe   : > { %s175_s28 = sshll.u32 %s955_s27, 4  ;;  %s956_s30 = smov [#allocation7]   ;;  %s176_s28 = int_to_ptr.vmem [resolvable:$true] %s175_s28 }
   0xf   : > { %s1213_s26 = scalar_select %p1035_p8, 1, 0 }
  0x10   : > { %p727_p9 = pneg %p1035_p8  ;;  %s191_s6 = sshll.u32 %s956_s30, 4  ;;  %s192_s6 = int_to_ptr.vmem [resolvable:$true] %s191_s6 }
  0x11   : > { %s816_s7 = scalar_lea.vmem %s176_s28, 1024  ;;  %p824_p3 = scmp.lt.s32.totalorder %s176_s28, %s176_s28 }
  0x12   : > { %p1043_p10 = pnand %p727_p9, %p1206_p1  ;;  %p817_p12 = scmp.ne.s32.totalorder %s176_s28, %s816_s7 }
  0x13   : > { %p825_p5 = scmp.lt.s32.totalorder %s816_s7, %s816_s7 }
  0x14   : > { %p807_p11 = pneg %p1043_p10 }
  0x15   : > { %p826_p7 = por %p825_p5, %p824_p3 }
  0x16   : > { %p819_p13 = pnand %p817_p12, %p807_p11 }
  0x18   : > { %p820_p0 = pneg %p819_p13 }
  0x1a   : > { %p827_p9 = pnand %p826_p7, %p820_p0 }
  0x1c   : > { %830 = shalt.err (!%p827_p9)
}
  0x1d   : > { %s1207_s8 = smov 64   ;;  %s958_s9 = smov 4  }
  0x1e   : > { %730 = dma.hbm_to_vmem [thread:$0]  (!%p1043_p10), %s1201_s1, 1024, %s176_s28, [#allocation6], %s1207_s8, %s1207_s8, %s958_s9  }
  0x1f   : > { %s842_s12 = scalar_lea.vmem %s192_s6, 1024  ;;  %p850_p0 = scmp.lt.s32.totalorder %s192_s6, %s192_s6 }
  0x20   : > { %p843_p12 = scmp.ne.s32.totalorder %s192_s6, %s842_s12  ;;  %p851_p5 = scmp.lt.s32.totalorder %s842_s12, %s842_s12 }
  0x22   : > { %p845_p13 = pnand %p843_p12, %p807_p11  ;;  %p852_p7 = por %p851_p5, %p850_p0 }
  0x24   : > { %p846_p3 = pneg %p845_p13 }
  0x26   : > { %p853_p9 = pnand %p852_p7, %p846_p3 }
  0x28   : > { %856 = shalt.err (!%p853_p9)
}
  0x29   : > { %733 = dma.hbm_to_vmem [thread:$0]  (!%p1043_p10), %s1203_s3, 1024, %s192_s6, [#allocation6], %s1207_s8, %s1207_s8, %s958_s9  }
  0x2a   : > { %s1072_s15 = sadd.s32 1, %s953_s21   ;;  %s29_s16 = sadd.s32 1, %s949_s20 }
  0x2b   : > { %s26_s17 = ssub.s32 %s953_s21, %s1072_s15  ;;  %p36_p11 = scmp.ne.s32.totalorder %s949_s20, %s945_s19 }
  0x2c   : > { %p27_p12 = scmp.eq.s32.totalorder %s26_s17, 0  ;;  %p37_p13 = scmp.eq.s32.totalorder %s953_s21, 0 }
  0x2d   : > { %p1082_p3 = por %p150_p2, %p36_p11  ;;  %p744_p0 = scmp.lt.s32.totalorder %s953_s21, 4 }
  0x2e   : > { %s1088_s27 = scalar_select %p27_p12, %s949_s20, %s29_s16  }
  0x2f   : > { %s1215_s23 = scalar_select %p1082_p3, 1, 0 }
  0x30   : > { %p38_p5 = por %p37_p13, %p36_p11  ;;  %s208_s28 = sand.u32 1, %s949_s20  }
  0x31   : > { %s623_s29 = sshll.u32 %s208_s28, 3  ;;  %s655_s30 = sshll.u32 %s953_s21, 7 }
  0x32   : > { %s1095_s10 = scalar_lea.hbm %s1200_s0, %s655_s30  ;;  %s212_s11 = scalar_lea.vmem [#allocation2], %s623_s29 }
  0x33   : > { %s219_s12 = sshll.u32 %s212_s11, 4  ;;  %p1099_p2 = pnand %p744_p0, %p38_p5  ;;  %s1097_s12 = int_to_ptr.vmem [resolvable:$true] %s219_s12 }
  0x34   : > { %s1103_s14 = scalar_lea.sflag [#allocation3], %s208_s28  ;;  %s857_s16 = scalar_lea.hbm %s1095_s10, 128 }
  0x35   : > { %p858_p10 = scmp.ne.s32.totalorder %s1095_s10, %s857_s16  ;;  %p859_p7 = pneg %p1099_p2 }
  0x36   : > { %s862_s29 = scalar_lea.hbm %s1200_s0, 512  ;;  %p863_p12 = scmp.lt.s32.totalorder %s1095_s10, %s1200_s0 }
  0x37   : > { %p860_p9 = pnand %p859_p7, %p858_p10  ;;  %p864_p13 = scmp.lt.s32.totalorder %s862_s29, %s857_s16 }
  0x39   : > { %p861_p11 = pneg %p860_p9  ;;  %p865_p0 = por %p864_p13, %p863_p12 }
  0x3b   : > { %p866_p5 = pnand %p865_p0, %p861_p11 }
  0x3d   : > { %869 = shalt.err (!%p866_p5)
}
  0x3e   : > { %s870_s28 = scalar_lea.vmem %s1097_s12, 128  ;;  %s959_s11 = smov [#allocation2]  }
  0x3f   : > { %p871_p1 = scmp.ne.s32.totalorder %s1097_s12, %s870_s28  ;;  %s875_s8 = sshll.u32 %s959_s11, 4  ;;  %s876_s8 = int_to_ptr.vmem [resolvable:$false] %s875_s8 }
  0x40   : > { %s877_s17 = scalar_lea.vmem %s876_s8, 256  ;;  %p878_p9 = scmp.lt.s32.totalorder %s1097_s12, %s876_s8 }
  0x41   : > { %p873_p6 = pnand %p871_p1, %p859_p7  ;;  %p879_p3 = scmp.lt.s32.totalorder %s877_s17, %s870_s28 }
  0x43   : > { %p874_p10 = pneg %p873_p6  ;;  %p880_p4 = por %p879_p3, %p878_p9 }
  0x45   : > { %p881_p8 = pnand %p880_p4, %p874_p10 }
  0x47   : > { %884 = shalt.err (!%p881_p8)
}
  0x48   : > { %s1217_s16 = smov 64   ;;  %p1218_p1 = scmp.ne.s32.totalorder %s1213_s26, 0 }
  0x49   : > { %737 = dma.hbm_to_vmem [thread:$0]  (!%p1099_p2), %s1095_s10, 128, %s1097_s12, %s1103_s14, %s1217_s16, %s1217_s16, %s958_s9  }
  0x4a   : > { %231 = sbr.rel (%p1218_p1) target bundleno = 533 (0x215), region = 40  ;;  %s1130_s30 = sand.u32 (!%p1218_p1), 1, %s945_s19  }
  0x4b   : > { %s627_s8 = sshll.u32 (!%p1218_p1), %s1130_s30, 3  ;;  %s234_s29 = scalar_lea.sflag (!%p1218_p1), [#allocation3], %s1130_s30 }
  0x4c   : > { %s1134_s6 = scalar_lea.vmem (!%p1218_p1), [#allocation2], %s627_s8  ;;  %p1219_p4 = scmp.ne.s32.totalorder (!%p1218_p1), %s1211_s24, 0 }
  0x4f   : > { %928 = dma.done.wait (%p1219_p4), %s234_s29, 128  }
  0x50   : > { %930 = vsyncadd (%p1219_p4), %s234_s29, 4294967168  ;;  %p1220_p6 = scmp.eq.s32.totalorder %s1016_s22, 0 }
  0x52   : > { %932 = dma.done.wait (%p1220_p6), [#allocation6], 2048   ;;  %p1221_p8 = pmov %p1220_p6 }
  0x53   : > { %v960_v0 = vmov 0.0   ;;  %vm961_vm0 = vmmov 0   ;;  %v788_v1 = vld [vmem:[#allocation5 + $0x38] sm:$0xff]   ;;  %v789_v2 = vld [vmem:[#allocation5 + $0x30] sm:$0xff]   ;;  %v790_v3 = vld [vmem:[#allocation5 + $0x28] sm:$0xff]   ;;  %s630_s9 = sshll.u32 %s1130_s30, 4 }
  0x54   : > { %934 = vsyncadd (%p1221_p8), [#allocation6], 4294965248  ;;  %675 = vmatprep.subr.bf16.mxu0 %v960_v0  ;;  %691 = vmatprep.mubr.msk.bf16.mxu0 %vm961_vm0, %v960_v0  ;;  %v797_v4 = vld [vmem:[#allocation7 + $0x38] sm:$0xff]   ;;  %v791_v5 = vld [vmem:[#allocation5 + $0x20] sm:$0xff]   ;;  %s271_s13 = scalar_lea.vmem [#allocation8], %s630_s9  ;;  %s656_s7 = sshll.u32 %s1016_s22, 8 }
  0x55   : > { %695 = vmatprep.subr.bf16.mxu1 %v960_v0  ;;  %711 = vmatprep.mubr.msk.bf16.mxu1 %vm961_vm0, %v960_v0  ;;  %v798_v6 = vld [vmem:[#allocation7 + $0x30] sm:$0xff]   ;;  %v792_v7 = vld [vmem:[#allocation5 + $0x18] sm:$0xff]   ;;  %v799_v8 = vld [vmem:[#allocation7 + $0x28] sm:$0xff]   ;;  %s526_s14 = sshll.u32 %s271_s13, 4  ;;  %s1158_s17 = scalar_lea.hbm %s1205_s5, %s656_s7  ;;  %s1153_s14 = int_to_ptr.vmem [resolvable:$true] %s526_s14 }
  0x56   : > { %676 = vmatpush3.bf16.msra.mxu0 %v788_v1  ;;  %696 = vmatpush3.bf16.msra.mxu1 %v797_v4  ;;  %v793_v9 = vld [vmem:[#allocation5 + $0x10] sm:$0xff]   ;;  %v800_v10 = vld [vmem:[#allocation7 + $0x20] sm:$0xff]   ;;  %v794_v11 = vld [vmem:[#allocation5 + $0x8] sm:$0xff]   ;;  %s513_s16 = scalar_lea.sflag [#allocation4], %s1130_s30  ;;  %s885_s8 = scalar_lea.vmem %s1153_s14, 256 }
  0x57   : > { %677 = vmatprep.subr.bf16.mxu0 %v960_v0  ;;  %697 = vmatprep.subr.bf16.mxu1 %v960_v0  ;;  %v801_v12 = vld [vmem:[#allocation7 + $0x18] sm:$0xff]   ;;  %v795_v13 = vld [vmem:[#allocation5] sm:$0xff]   ;;  %v802_v15 = vld [vmem:[#allocation7 + $0x10] sm:$0xff]   ;;  %p886_p3 = scmp.ne.s32.totalorder %s1153_s14, %s885_s8  ;;  %p1222_p2 = scmp.ne.s32.totalorder %s1215_s23, 0 }
  0x58   : > { %v796_v14 = vld [vmem:[%s1134_s6] sm:$0xff]   ;;  %v803_v16 = vld [vmem:[#allocation7 + $0x8] sm:$0xff]   ;;  %v804_v17 = vld [vmem:[#allocation7] sm:$0xff]   ;;  %s962_s22 = smov [#allocation8]  }
  0x59   : > { %v631_v18 = vld [vmem:[%s1202_s2] ss:$0 sm:$0xff]  ;;  %p887_p7 = pnand %p886_p3, %p1222_p2  ;;  %s889_s29 = sshll.u32 %s962_s22, 4  ;;  %s890_s29 = int_to_ptr.vmem [resolvable:$false] %s889_s29 }
  0x5a   : > { %678 = vmatpush3.bf16.msra.mxu0 %v789_v2  ;;  %698 = vmatpush3.bf16.msra.mxu1 %v798_v6  ;;  %v641_v28 = vld [vmem:[%s1204_s4] ss:$0 sm:$0xff]  ;;  %s891_s6 = scalar_lea.vmem %s890_s29, 512  ;;  %p892_p12 = scmp.lt.s32.totalorder %s1153_s14, %s890_s29 }
  0x5b   : > { %679 = vmatprep.subr.bf16.mxu0 %v960_v0  ;;  %699 = vmatprep.subr.bf16.mxu1 %v960_v0  ;;  %p888_p11 = pneg %p887_p7  ;;  %p893_p13 = scmp.lt.s32.totalorder %s891_s6, %s885_s8 }
  0x5d   : > { %p894_p0 = por %p893_p13, %p892_p12 }
  0x5e   : > { %680 = vmatpush3.bf16.msra.mxu0 %v790_v3  ;;  %700 = vmatpush3.bf16.msra.mxu1 %v799_v8 }
  0x5f   : > { %681 = vmatprep.subr.bf16.mxu0 %v960_v0  ;;  %701 = vmatprep.subr.bf16.mxu1 %v960_v0  ;;  %p895_p5 = pnand %p894_p0, %p888_p11 }
  0x62   : > { %682 = vmatpush3.bf16.msra.mxu0 %v791_v5  ;;  %702 = vmatpush3.bf16.msra.mxu1 %v800_v10 }
  0x63   : > { %683 = vmatprep.subr.bf16.mxu0 %v960_v0  ;;  %703 = vmatprep.subr.bf16.mxu1 %v960_v0 }
  0x66   : > { %684 = vmatpush3.bf16.msra.mxu0 %v792_v7  ;;  %704 = vmatpush3.bf16.msra.mxu1 %v801_v12 }
  0x67   : > { %685 = vmatprep.subr.bf16.mxu0 %v960_v0  ;;  %705 = vmatprep.subr.bf16.mxu1 %v960_v0 }
  0x6a   : > { %686 = vmatpush3.bf16.msra.mxu0 %v793_v9  ;;  %706 = vmatpush3.bf16.msra.mxu1 %v802_v15 }
  0x6b   : > { %687 = vmatprep.subr.bf16.mxu0 %v960_v0  ;;  %707 = vmatprep.subr.bf16.mxu1 %v960_v0 }
  0x6e   : > { %688 = vmatpush3.bf16.msra.mxu0 %v794_v11  ;;  %708 = vmatpush3.bf16.msra.mxu1 %v803_v16 }
  0x6f   : > { %689 = vmatprep.subr.bf16.mxu0 %v960_v0  ;;  %709 = vmatprep.subr.bf16.mxu1 %v960_v0 }
  0x72   : > { %690 = vmatpush3.bf16.msra.mxu0 %v795_v13  ;;  %710 = vmatpush3.bf16.msra.mxu1 %v804_v17 }
  0x75   : > { %692 = vmatmul.mubr.bf16.vlgmr.msra.gmra.mxu0 %v796_v14 }
 0x135   : > { %v388_v19 = vpop.f32.mrf.mxu0 }
 0x136   : > { %v389_v21 = vadd.f32 %v631_v18, %v388_v19 }
 0x137   : > { %v693_v20 = vpop.f32.mrf.mxu0 }
 0x138   : > { %v395_v25 = vmax.f32 %v389_v21, 0.0 }
 0x139   : > { %v391_v22 = vpop.f32.mrf.mxu0 }
 0x13a   : > { %v392_v23 = vadd.f32 %v631_v18, %v391_v22 }
 0x13b   : > { %v694_v24 = vpop.f32.mrf.mxu0 }
 0x13c   : > { %v396_v26 = vmax.f32 %v392_v23, 0.0 }
 0x13e   : > { %v397_v27 = vpack.c.bf16 %v396_v26, %v395_v25 }
 0x140   : > { %712 = vmatmul.mubr.bf16.vlgmr.msra.gmra.mxu1 %v397_v27 }
 0x200   : > { %v503_v29 = vpop.f32.mrf.mxu1 }
 0x201   : > { %v504_v30 = vadd.f32 %v641_v28, %v503_v29 }
 0x202   : > { %v713_v31 = vpop.f32.mrf.mxu1 }
 0x203   : > { %510 = vst [vmem:[%s271_s13] sm:$0xff] %v504_v30 }
 0x204   : > { %v506_v32 = vpop.f32.mrf.mxu1 }
 0x205   : > { %v507_v33 = vadd.f32 %v641_v28, %v506_v32 }
 0x206   : > { %v714_v34 = vpop.f32.mrf.mxu1 }
 0x207   : > { %511 = vst [vmem:[%s271_s13 + $0x8] sm:$0xff] %v507_v33 }
 0x208   : > { %898 = shalt.err (!%p895_p5)
}
 0x209   : > { %s899_s24 = scalar_lea.hbm %s1158_s17, 256  ;;  %s903_s10 = scalar_lea.hbm %s1205_s5, 1024 }
 0x20a   : > { %p900_p10 = scmp.ne.s32.totalorder %s1158_s17, %s899_s24  ;;  %p904_p4 = scmp.lt.s32.totalorder %s1158_s17, %s1205_s5 }
 0x20b   : > { %p905_p6 = scmp.lt.s32.totalorder %s903_s10, %s899_s24 }
 0x20c   : > { %p901_p9 = pnand %p900_p10, %p1222_p2 }
 0x20d   : > { %p906_p8 = por %p905_p6, %p904_p4 }
 0x20e   : > { %p902_p1 = pneg %p901_p9 }
 0x210   : > { %p907_p3 = pnand %p906_p8, %p902_p1 }
 0x212   : > { %910 = shalt.err (!%p907_p3)
}
 0x213   : > { %s963_s7 = smov 128   ;;  %s964_s28 = smov 8  }
 0x214   : > { %725 = dma.vmem_to_hbm [thread:$0]  (%p1222_p2), %s1153_s14, 256, %s1158_s17, %s513_s16, %s963_s7, %s963_s7, %s964_s28  }
 0x215 PF: > { %p747_p7 = scmp.ge.s32.totalorder %s953_s21, 2  ;;  %s541_s11 = sand.u32 1, %s941_s18  }
 0x216   : > { %p1223_p11 = scmp.ne.s32.totalorder %s1212_s25, 0  ;;  %s542_s8 = scalar_lea.sflag [#allocation4], %s541_s11 }
 0x218   : > { %p739_p12 = pnand %p747_p7, %p1223_p11 }
 0x21a   : > { %p740_p13 = pneg %p739_p12 }
 0x21c   : > { %936 = dma.done.wait (%p740_p13), %s542_s8, 256  }
 0x21d   : > { %938 = vsyncadd (%p740_p13), %s542_s8, 4294967040  ;;  %p19_p0 = scmp.ge.s32.totalorder %s1072_s15, 6   ;;  %s1224_s18 = smov %s945_s19 }
 0x21e   : > { %s1225_s19 = smov %s949_s20  ;;  %s1226_s20 = smov %s1088_s27 }
 0x21f   : > { %s1227_s21 = smov %s1072_s15  ;;  %21 = sbr.rel (!%p19_p0) target bundleno = 6 (0x6), region = 93 }
 0x224   :  { %547 = vsyncpa [#allocation3], 1 }
 0x225   :  { %549 = vsyncpa [#allocation3 + $0x1], 1 }
 0x226   :  { %550 = vsyncpa [#allocation6], 1 }
 0x227   :  { %551 = vsyncpa [#allocation4], 1 }
 0x228   :  { %553 = vsyncpa [#allocation4 + $0x1], 1 }

</bundles_post_ra>
